<compile_context>
chip_gen: v5e
topology: v5e:2x2
jax: 0.10.0
libtpu: 0.0.40
codegen_flags: <defaults>
</compile_context>

<pallas_src>
import functools

import jax
import jax.numpy as jnp
from jax import lax
from jax.experimental import pallas as pl
from jax.experimental.pallas import tpu as pltpu

_LANE = 128
_MAX_BLOCK_ROWS = 4096                   # 4096 x 128 f32 tile = 2 MiB per pipeline buffer
_NUM_SUM_CHUNKS = 2                      # pass-1 split -> shardable across 2 TCs on v7x
_RESIDENT_MAX_ELEMS = 2 * 1024 * 1024    # <= 8 MiB in + 8 MiB out resident in VMEM (f32)
_RESIDENT_VMEM_LIMIT = 48 << 20          # safe on v5e/v6e (128 MiB) and v7x (64 MiB)
_TILED_VMEM_LIMIT = 32 << 20
_PALLAS_MIN_ELEMS = 64 * 1024            # below this the fused-XLA path wins on launch cost


# ----------------------------------------------------------------------------- kernels


def _resident_softmax_kernel(x_ref, o_ref, *, n, need_mask):
    """Single pass, whole tensor resident in VMEM: o = exp(x) * (1 / sum(exp(x)))."""
    e = jnp.exp(x_ref[...].astype(jnp.float32))
    if need_mask:
        row = lax.broadcasted_iota(jnp.int32, e.shape, 0)
        lane = lax.broadcasted_iota(jnp.int32, e.shape, 1)
        e = jnp.where(row * _LANE + lane < n, e, 0.0)
    inv = 1.0 / jnp.sum(e)   # exact scalar divide; approx recip too lossy for a global sum
    o_ref[...] = (e * inv).astype(o_ref.dtype)


def _sum_exp_kernel(x_ref, part_ref, acc_ref, *, tiles_per_chunk, block_rows, n, need_mask):
    """Pass 1 (tiled): per-chunk partial sum(exp(x)) accumulated in an (8,128) scratch."""
    i = pl.program_id(1)

    @pl.when(i == 0)
    def _():
        acc_ref[...] = jnp.zeros_like(acc_ref)

    e = jnp.exp(x_ref[...].astype(jnp.float32))
    if need_mask:
        c = pl.program_id(0)
        start_row = (c * tiles_per_chunk + i) * block_rows
        row = start_row + lax.broadcasted_iota(jnp.int32, e.shape, 0)
        lane = lax.broadcasted_iota(jnp.int32, e.shape, 1)
        e = jnp.where(row * _LANE + lane < n, e, 0.0)

    # Sublane-grouped vector accumulation only (VPU adds, no per-step XLU reduce).
    acc_ref[...] += jnp.sum(e.reshape(-1, 8, _LANE), axis=0)

    @pl.when(i == pl.num_programs(1) - 1)
    def _():
        part_ref[0] = acc_ref[...]   # final cross-lane reduce happens in the wrapper


def _normalize_kernel(inv_ref, x_ref, o_ref):
    """Pass 2 (tiled): o = exp(x) * inv; inv precomputed once in the wrapper (SMEM scalar)."""
    o_ref[...] = (jnp.exp(x_ref[...].astype(jnp.float32)) * inv_ref[0]).astype(o_ref.dtype)


# ----------------------------------------------------------------------------- wrappers


def _tiled_softmax(x2d, n, rows, block_rows, out_dtype):
    block_rows = max(8, min(block_rows, rows))
    block_rows -= block_rows % 8                     # keep sublane alignment

    tiles = pl.cdiv(rows, block_rows)
    n_chunks = min(_NUM_SUM_CHUNKS, tiles)
    tiles_per_chunk = pl.cdiv(tiles, n_chunks)
    # Mask only when the grid's coverage is not exactly the tensor.
    need_mask = (n_chunks * tiles_per_chunk * block_rows * _LANE) != n

    if n_chunks * tiles_per_chunk > tiles:
        # Clamp fully out-of-range tiles back onto the last tile; the in-kernel mask
        # zeroes their contribution, so the re-read is harmless.
        in_map_1 = lambda c, i: (jnp.minimum(c * tiles_per_chunk + i, tiles - 1), 0)
    else:
        in_map_1 = lambda c, i: (c * tiles_per_chunk + i, 0)

    # Pass 1: per-chunk partial sums of exp(x).  Chunk axis "parallel" -> v7x megacore.
    partials = pl.pallas_call(
        functools.partial(_sum_exp_kernel, tiles_per_chunk=tiles_per_chunk,
                          block_rows=block_rows, n=n, need_mask=need_mask),
        out_shape=jax.ShapeDtypeStruct((n_chunks, 8, _LANE), jnp.float32),
        grid_spec=pltpu.PrefetchScalarGridSpec(
            num_scalar_prefetch=0,
            grid=(n_chunks, tiles_per_chunk),
            in_specs=[pl.BlockSpec((block_rows, _LANE), in_map_1)],
            out_specs=pl.BlockSpec((1, 8, _LANE), lambda c, i: (c, 0, 0)),
            scratch_shapes=[pltpu.VMEM((8, _LANE), jnp.float32)],
        ),
        compiler_params=pltpu.CompilerParams(
            dimension_semantics=("parallel", "arbitrary"),
            vmem_limit_bytes=_TILED_VMEM_LIMIT),
    )(x2d)

    # Hoisted, exact reciprocal of the global sum (one scalar divide in the wrapper).
    inv = (1.0 / jnp.sum(partials)).reshape(1).astype(jnp.float32)

    # Pass 2: o = exp(x) * inv; embarrassingly parallel over tiles.
    # TODO(synk): on v7x verify "parallel" actually shards across both TCs (else CORE_PARALLEL).
    out2d = pl.pallas_call(
        _normalize_kernel,
        out_shape=jax.ShapeDtypeStruct((rows, _LANE), out_dtype),
        grid_spec=pltpu.PrefetchScalarGridSpec(
            num_scalar_prefetch=0,
            grid=(tiles,),
            in_specs=[pl.BlockSpec(memory_space=pltpu.MemorySpace.SMEM),
                      pl.BlockSpec((block_rows, _LANE), lambda i: (i, 0))],
            out_specs=pl.BlockSpec((block_rows, _LANE), lambda i: (i, 0)),
        ),
        compiler_params=pltpu.CompilerParams(
            dimension_semantics=("parallel",),
            vmem_limit_bytes=_TILED_VMEM_LIMIT),
    )(inv, x2d)
    return out2d


def _global_softmax_pallas(x, block_rows, force_tiled):
    orig_shape, orig_dtype = x.shape, x.dtype
    n = x.size

    flat = x.reshape(-1)
    rows = pl.cdiv(n, _LANE)
    lane_pad = rows * _LANE - n
    if lane_pad:
        # TODO(synk): a fully copy-free ragged tail needs a dedicated 1-D tail kernel;
        # this pads <=127 elements purely for the 2-D reshape (masked in-kernel, so the
        # fill value is irrelevant).
        flat = jnp.pad(flat, (0, lane_pad))
    x2d = flat.reshape(rows, _LANE)

    if (not force_tiled) and n <= _RESIDENT_MAX_ELEMS:
        # Whole tensor resident in VMEM: 1 read + 1 write of x, one launch.
        out2d = pl.pallas_call(
            functools.partial(_resident_softmax_kernel, n=n, need_mask=bool(lane_pad)),
            out_shape=jax.ShapeDtypeStruct((rows, _LANE), orig_dtype),
            in_specs=[pl.BlockSpec(memory_space=pltpu.MemorySpace.VMEM)],
            out_specs=pl.BlockSpec(memory_space=pltpu.MemorySpace.VMEM),
            compiler_params=pltpu.CompilerParams(vmem_limit_bytes=_RESIDENT_VMEM_LIMIT),
        )(x2d)
    else:
        out2d = _tiled_softmax(x2d, n, rows, block_rows, orig_dtype)

    out_flat = out2d.reshape(-1)
    if lane_pad:
        out_flat = out_flat[:n]
    return out_flat.reshape(orig_shape)


def global_softmax(x, *, force_pallas=False, force_tiled=False, block_rows=_MAX_BLOCK_ROWS):
    """exp(x) / sum(exp(x)) over ALL elements, preserving shape and dtype.

    Note: like the reference PyTorch module there is no max-subtraction, so inputs
    whose exp() overflows f32 will NaN the whole output.
    """
    if x.size == 0:
        return x
    if (not force_pallas) and x.size < _PALLAS_MIN_ELEMS:
        # Tiny-input fast path: the fixed pallas_call launch cost dominates here.
        e = jnp.exp(x)
        return (e / jnp.sum(e)).astype(x.dtype)
    return _global_softmax_pallas(x, block_rows, force_tiled)


if __name__ == "__main__":
    key = jax.random.PRNGKey(0)
    k1, k2, k3 = jax.random.split(key, 3)

    # Small NCHW input consistent with the module's forward(x): batch=2, channels=4, 16x16.
    x_small = jax.random.normal(k1, (2, 4, 16, 16), dtype=jnp.float32)     # 2048 elems
    # Larger input: exercises the resident path and (forced) the tiled two-pass path.
    x_big = jax.random.normal(k2, (2, 16, 128, 128), dtype=jnp.float32)    # 524288 elems
    # Unaligned size: exercises in-kernel tail masking, partial blocks and tile clamping.
    x_ragged = jax.random.normal(k3, (3, 5, 991), dtype=jnp.float32)       # 14865 elems

    def ref(x):
        e = jnp.exp(x)
        return e / jnp.sum(e)

    out_small_fast = jax.block_until_ready(global_softmax(x_small))                         # XLA path
    out_small = jax.block_until_ready(global_softmax(x_small, force_pallas=True))           # resident
    out_big = jax.block_until_ready(global_softmax(x_big, force_pallas=True))               # resident
    out_big_tiled = jax.block_until_ready(
        global_softmax(x_big, force_pallas=True, force_tiled=True, block_rows=512))         # tiled, aligned
    out_ragged_tiled = jax.block_until_ready(
        global_softmax(x_ragged, force_pallas=True, force_tiled=True, block_rows=24))       # tiled, masked

    assert out_small.shape == x_small.shape and out_small.dtype == x_small.dtype
    assert out_big.shape == x_big.shape and out_big.dtype == x_big.dtype
    assert out_big_tiled.shape == x_big.shape and out_big_tiled.dtype == x_big.dtype
    assert out_ragged_tiled.shape == x_ragged.shape and out_ragged_tiled.dtype == x_ragged.dtype

    assert jnp.allclose(out_small_fast, ref(x_small), atol=1e-6, rtol=1e-5)
    assert jnp.allclose(out_small, ref(x_small), atol=1e-6, rtol=1e-5)
    assert jnp.allclose(out_big, ref(x_big), atol=1e-6, rtol=1e-5)
    assert jnp.allclose(out_big_tiled, ref(x_big), atol=1e-6, rtol=1e-5)
    assert jnp.allclose(out_ragged_tiled, ref(x_ragged), atol=1e-6, rtol=1e-5)

    print("KERNEL_OK")
</pallas_src>

<mosaic_0001>
module attributes {stable_mosaic.version = 11 : i64} {
  func.func @_resident_softmax_kernel(%arg0: memref<16x128xf32, #tpu.memory_space<vmem>>, %arg1: memref<16x128xf32, #tpu.memory_space<vmem>>) attributes {dimension_semantics = [], scalar_prefetch = 0 : i64, scratch_operands = 0 : i64, tpu.core_type = #tpu.core_type<tc>} {
    %c0 = arith.constant 0 : index
    %c0_0 = arith.constant 0 : index
    %0 = vector.load %arg0[%c0, %c0_0] : memref<16x128xf32, #tpu.memory_space<vmem>>, vector<16x128xf32>
    %1 = math.exp %0 : vector<16x128xf32>
    %2 = vector.shape_cast %1 : vector<16x128xf32> to vector<1x16x128xf32>
    %cst = arith.constant dense<0.000000e+00> : vector<1xf32>
    %3 = vector.multi_reduction <add>, %2, %cst [1, 2] : vector<1x16x128xf32> to vector<1xf32>
    %4 = vector.shape_cast %3 : vector<1xf32> to vector<1x1x1xf32>
    %5 = vector.extract %4[0, 0, 0] : f32 from vector<1x1x1xf32>
    %cst_1 = arith.constant 1.000000e+00 : f32
    %6 = arith.divf %cst_1, %5 : f32
    %7 = vector.broadcast %6 : f32 to vector<16x128xf32>
    %8 = arith.mulf %1, %7 : vector<16x128xf32>
    %c0_2 = arith.constant 0 : index
    %c0_3 = arith.constant 0 : index
    %9 = vector.load %arg1[%c0_2, %c0_3] : memref<16x128xf32, #tpu.memory_space<vmem>>, vector<16x128xf32>
    tpu.vector_store %arg1[%c0_2, %c0_3], %8 {strides = array<i32>} : memref<16x128xf32, #tpu.memory_space<vmem>>, vector<16x128xf32>,
    return
  }
}

</mosaic_0001>

<bundles_post_ra>
// kernel: tpu_custom_call.1
= control target key start
LH: loop header
LB: loop body
LE: loop exit
PB: predicated region body
PF: predicated region fallthrough
CT: control target
= control target key end

     0   :  { %6 = vsyncpa [#allocation3], 0  ;;  %s173_s0 = inlined_call_operand.hbm [shape: f32[16,128], index: 0, kind: input, shape index: {}]   ;;  %s174_s1 = inlined_call_operand.hbm [shape: f32[16,128], index: 1, kind: output, shape index: {}]  }
   0x1   :  { %7 = vsyncpa [#allocation4], 0  ;;  %s12_s8 = sshll.u32 %s173_s0, 4  ;;  %s147_s9 = smov [#allocation2]   ;;  %s13_s8 = int_to_ptr.hbm [resolvable:$true] %s12_s8 }
   0x2   :  { %s14_s10 = sshll.u32 %s147_s9, 4  ;;  %s148_s11 = smov 128   ;;  %s15_s10 = int_to_ptr.vmem [resolvable:$true] %s14_s10 }
   0x3   :  { %s149_s12 = smov 8  }
   0x4   :  { %20 = dma.hbm_to_vmem [thread:$0]  %s13_s8, 256, %s15_s10, [#allocation3], %s148_s11, %s148_s11, %s149_s12  }
   0x5   :  { %143 = dma.done.wait [#allocation3], 256  }
   0x6   :  { %144 = vsyncadd [#allocation3], 4294967040  ;;  %v25_v0 = vld [vmem:[#allocation2] sm:$0xff]  ;;  %v26_v1 = vld [vmem:[#allocation2 + $0x8] sm:$0xff]  ;;  %s150_s13 = smov [#allocation5]   ;;  %s68_s18 = sshll.u32 %s174_s1, 4  ;;  %s69_s18 = int_to_ptr.hbm [resolvable:$true] %s68_s18 }
   0x7   :  { %v27_v2 = vmul.f32 1.442695, %v25_v0  ;;  %v29_v3 = vmul.f32 1.442695, %v26_v1  ;;  %s66_s14 = sshll.u32 %s150_s13, 4  ;;  %s67_s14 = int_to_ptr.vmem [resolvable:$true] %s66_s14 }
   0x9   :  { %89 = vpow2.f32 %v27_v2 }
   0xa   :  { %91 = vpow2.f32 %v29_v3 }
   0xf   :  { %v90_v4 = vpop.eup %89 }
  0x10   :  { %v92_v5 = vpop.eup %91 }
  0x11   :  { %v31_v6 = vadd.f32 %v92_v5, %v90_v4 }
  0x13   :  { %32 = vadd.xlane.f32.xlu0 %v31_v6 }
  0x86   :  { %v33_v7 = vpop.xlane.xlu0 %32 }
  0x87   :  { %v34_v8 = vrot.slane %v33_v7, 4 }
  0x89   :  { %v35_v9 = vadd.f32 %v34_v8, %v33_v7 }
  0x8b   :  { %v36_v10 = vrot.slane %v35_v9, 2 }
  0x8d   :  { %v37_v11 = vadd.f32 %v36_v10, %v35_v9 }
  0x8f   :  { %v38_v12 = vrot.slane %v37_v11, 1 }
  0x91   :  { %v39_v13 = vadd.f32 %v38_v12, %v37_v11 }
  0x93   :  { %81 = vpush %v39_v13 }
  0xc4   :  { %s82_s0 = spop %81 }
  0xc5   :  { %v41_v14 = vstv %s82_s0 }
  0xc6   :  { %93 = vrcp.f32 %v41_v14  ;;  %v53_v18 = vand.u32 2147483648, %v41_v14  ;;  %v51_v20 = vand.u32 2147483647, %v41_v14  ;;  %vm47_vm1 = vweird.f32 %v41_v14 }
  0xc8   :  { %v54_v22 = vor.u32 1.1754944e-38, %v53_v18  ;;  %vm52_vm3 = vcmp.eq.f32.partialorder %v51_v20, 8.507059e+37 }
  0xcc   :  { %v94_v15 = vpop.eup %93 }
  0xcd   :  { %v43_v16 = vmul.f32 %v94_v15, %v41_v14  ;;  %vm48_vm0 = vweird.f32 %v94_v15 }
  0xce   :  { %vm49_vm2 = vmor %vm47_vm1, %vm48_vm0 }
  0xcf   :  { %v44_v17 = vsub.f32 1.0, %v43_v16 }
  0xd1   :  { %v45_v19 = vmul.f32 %v94_v15, %v44_v17 }
  0xd3   :  { %v46_v21 = vadd.f32 %v94_v15, %v45_v19 }
  0xd5   :  { %v50_v23 = vsel %vm49_vm2, %v94_v15, %v46_v21 }
  0xd6   :  { %v55_v24 = vsel %vm52_vm3, %v54_v22, %v50_v23 }
  0xd7   :  { %83 = vpush %v55_v24 }
 0x108   :  { %s84_s15 = spop %83 }
 0x109   :  { %v57_v25 = vstv %s84_s15 }
 0x10a   :  { %v58_v26 = vmul.f32 %v90_v4, %v57_v25  ;;  %v59_v27 = vmul.f32 %v92_v5, %v57_v25 }
 0x10c   :  { %60 = vst [vmem:[#allocation5] sm:$0xff] %v58_v26 }
 0x10d   :  { %61 = vst [vmem:[#allocation5 + $0x8] sm:$0xff] %v59_v27 }
 0x10e   :  { %74 = dma.vmem_to_hbm [thread:$0]  %s67_s14, 256, %s69_s18, [#allocation4], %s148_s11, %s148_s11, %s149_s12  }
 0x10f   :  { %145 = dma.done.wait [#allocation4], 256  }
 0x110   :  { %146 = vsyncadd [#allocation4], 4294967040 }
 0x111   :  { %79 = vsyncpa [#allocation3], 1 }
 0x112   :  { %80 = vsyncpa [#allocation4], 1 }

</bundles_post_ra>
